<compile_context>
chip_gen: v7x
topology: tpu7x:2x2x1
jax: 0.10.0
libtpu: 0.0.40
codegen_flags: <defaults>
</compile_context>

<pallas_src>
import jax
import jax.numpy as jnp
from jax.experimental import pallas as pl
from jax.experimental.pallas import tpu as pltpu


def _bahdanau_block_kernel(qp_ref, k_ref, v_ref, mask_ref, wk_ref, va_ref, o_ref):
    """One batch-block (BB rows) per grid step.

    qp_ref   : (BB, K)     bf16  precomputed q_rep @ Wq + b
    k_ref    : (BB, S, K)  bf16  encoder states
    v_ref    : (BB, S, Dv) bf16  encoder values
    mask_ref : (BB, S)     f32   1 = keep, 0 = fill
    wk_ref   : (K, K)      f32   key half of W_a, pre-transposed (resident)
    va_ref   : (1, K)      f32   v_a row (resident)
    o_ref    : (BB, Dv)    context vectors (v's original dtype)
    """
    BB, S, K = k_ref.shape

    # One wide MXU matmul over all BB*S encoder rows of the block.
    # (Upcast first so the (BB,S,K)->(BB*S,K) collapse is a free f32
    #  sublane-aligned reshape when S % 8 == 0.)
    k_f32 = k_ref[...].astype(jnp.float32)
    kp = jnp.dot(k_f32.reshape(BB * S, K), wk_ref[...],
                 preferred_element_type=jnp.float32)                     # (BB*S, K)

    # e = v_a . tanh(qp + kp): tanh on the EUP, v_a contraction as a
    # VPU multiply + lane reduce (no N=1 MXU matmul).
    qp = qp_ref[...].astype(jnp.float32)                                 # (BB, K)
    h = jnp.tanh(kp.reshape(BB, S, K) + qp[:, None, :])                  # (BB, S, K)
    e = jnp.sum(h * va_ref[...], axis=-1)                                # (BB, S)

    # masked_fill(mask == 0, -1e10) + numerically stable softmax over S (lanes).
    e = jnp.where(mask_ref[...] != 0.0, e, jnp.float32(-1.0e10))
    m = jnp.max(e, axis=-1, keepdims=True)
    p = jnp.exp(e - m)
    a = p * pl.reciprocal(jnp.sum(p, axis=-1, keepdims=True), approx=True)  # (BB, S)

    # Context as a VPU weighted sum over S (no M=1 MXU matmuls).
    v_f32 = v_ref[...].astype(jnp.float32)                               # (BB, S, Dv)
    c = jnp.sum(a[:, :, None] * v_f32, axis=1)                           # (BB, Dv)
    o_ref[...] = c.astype(o_ref.dtype)


def _vmem_capacity_bytes():
    """Per-core VMEM capacity; conservative fallback (v7x per-TC) if unknown."""
    try:
        cap = int(getattr(pltpu.get_tpu_info(), "vmem_capacity_bytes"))
        if cap > 0:
            return cap
    except Exception:
        pass
    return 64 << 20


def _select_block_b(B, S, K, Dv, vmem_limit_bytes):
    """Batch rows per grid step: sized from the VMEM budget and a ~2 MiB/step
    streaming target (amortizes the ~600-cycle per-step pipeline overhead)."""
    if B <= 8:
        return B  # single block; block dim equals the full batch dim
    # per-batch-row VMEM cost of one grid step
    stream_row = S * (K + Dv) * 2 + K * 2 + S * 4                # bf16 k,v,qp + f32 mask
    tmp_row = (3 * K + 2 * Dv) * S * 4 + 4 * S * 4 + 2 * Dv * 4  # f32 kp/h, a*v, softmax temps
    per_row = 2 * stream_row + tmp_row                           # inputs double-buffered
    fixed = K * K * 4 + K * 4 + (4 << 20)                        # resident wk/va + headroom
    bb_vmem = max(8, ((vmem_limit_bytes // 2 - fixed) // per_row) // 8 * 8)
    # streaming target: >= ~2 MiB of (k + v) per step
    bb_stream = max(8, ((-(-(2 << 20) // (S * (K + Dv) * 2))) + 7) // 8 * 8)
    bb = min(bb_vmem, bb_stream)
    # keep >= 2 grid steps so v7x's two TensorCores both get work
    bb = min(bb, max(8, ((-(-B // 2)) + 7) // 8 * 8))
    # never exceed the (8-rounded) batch
    bb = min(bb, ((B + 7) // 8) * 8)
    return bb


def bahdanau_attention(q, k, v, wa_w, wa_b, va_w, mask=None):
    """Pallas implementation of BahdanauAttention.forward.

    Weights follow the torch nn.Linear convention: wa_w (K, 2K), wa_b (K,),
    va_w (1, K). Returns (B, 1, Dv) in v's dtype.
    """
    B, H = q.shape
    _, S, K = k.shape
    Dv = v.shape[-1]
    n_dir = K // H
    out_dtype = v.dtype

    # Split W_a along its input dim. The query half + bias only depend on q,
    # so fold them into one dense XLA matmul outside the kernel.
    wq = wa_w[:, :K].T.astype(jnp.float32)                       # (K, K)
    wk = wa_w[:, K:].T.astype(jnp.float32)                       # (K, K) resident in-kernel
    q_rep = jnp.tile(q.astype(jnp.float32), (1, n_dir))          # (B, K)
    qp = q_rep @ wq + wa_b.astype(jnp.float32)[None, :]          # (B, K)
    va = va_w.astype(jnp.float32).reshape(1, K)                  # (1, K)

    # Stream the big operands as bf16; the kernel upcasts and accumulates f32.
    # TODO(synk): if the encoder already emits bf16 states, pass them through
    # so these casts fuse with the producer instead of adding an HBM pass.
    k_in = k if k.dtype == jnp.bfloat16 else k.astype(jnp.bfloat16)
    v_in = v if v.dtype == jnp.bfloat16 else v.astype(jnp.bfloat16)
    qp_in = qp.astype(jnp.bfloat16)

    # Lane-dense (B, S) mask (general for torch-style broadcastable masks).
    if mask is None:
        mask2 = jnp.ones((B, S), jnp.float32)
    else:
        mask2 = jnp.broadcast_to(jnp.asarray(mask), (B, 1, S))
        mask2 = mask2.reshape(B, S).astype(jnp.float32)

    vmem_cap = _vmem_capacity_bytes()
    vmem_limit = min(vmem_cap * 3 // 4, 96 << 20)
    BB = _select_block_b(B, S, K, Dv, vmem_limit)
    n_blocks = pl.cdiv(B, BB)   # ragged last block handled by Pallas; no pad copies of k/v

    out2 = pl.pallas_call(
        _bahdanau_block_kernel,
        out_shape=jax.ShapeDtypeStruct((B, Dv), out_dtype),
        grid_spec=pltpu.PrefetchScalarGridSpec(
            num_scalar_prefetch=0,
            grid=(n_blocks,),
            in_specs=[
                pl.BlockSpec((BB, K), lambda b: (b, 0)),          # qp (bf16)
                pl.BlockSpec((BB, S, K), lambda b: (b, 0, 0)),    # k  (bf16)
                pl.BlockSpec((BB, S, Dv), lambda b: (b, 0, 0)),   # v  (bf16)
                pl.BlockSpec((BB, S), lambda b: (b, 0)),          # mask (f32)
                pl.BlockSpec((K, K), lambda b: (0, 0)),           # wk (resident f32)
                pl.BlockSpec((1, K), lambda b: (0, 0)),           # va (resident f32)
            ],
            out_specs=pl.BlockSpec((BB, Dv), lambda b: (b, 0)),
        ),
        compiler_params=pltpu.CompilerParams(
            dimension_semantics=("parallel",),
            vmem_limit_bytes=int(vmem_limit)),
    )(qp_in, k_in, v_in, mask2, wk, va)

    return out2.reshape(B, 1, Dv)


def bahdanau_attention_ref(q, k, v, wa_w, wa_b, va_w, mask=None):
    """Pure-JAX reference mirroring the PyTorch forward exactly (f32)."""
    B, S, K = k.shape
    H = q.shape[1]
    n_dir = K // H
    q_rep = jnp.tile(q[:, None, :], (1, S, n_dir))            # (B, S, K)
    cat = jnp.concatenate([q_rep, k], axis=-1)                # (B, S, 2K)
    e = jnp.tanh(cat @ wa_w.T + wa_b) @ va_w.T                # (B, S, 1)
    e = jnp.transpose(e, (0, 2, 1))                           # (B, 1, S)
    if mask is not None:
        e = jnp.where(mask == 0, -1.0e10, e)
    a = jax.nn.softmax(e, axis=-1)                            # (B, 1, S)
    return jnp.einsum("bos,bsd->bod", a, v)                   # (B, 1, Dv)


if __name__ == "__main__":
    key = jax.random.PRNGKey(0)
    kq, kk, kv, kw1, kb1, kw2, kq2, kk2, kv2, kl2 = jax.random.split(key, 10)

    # ---- small case: B=2, S=8, H=32 (single block) -------------------------
    B, S, H = 2, 8, 32
    K, Dv = H, H
    q = jax.random.normal(kq, (B, H), jnp.float32)
    k = jax.random.normal(kk, (B, S, K), jnp.float32)
    v = jax.random.normal(kv, (B, S, Dv), jnp.float32)

    bound1 = 1.0 / jnp.sqrt(2.0 * H)
    wa_w = jax.random.uniform(kw1, (H, 2 * H), jnp.float32, -bound1, bound1)
    wa_b = jax.random.uniform(kb1, (H,), jnp.float32, -bound1, bound1)
    bound2 = 1.0 / jnp.sqrt(1.0 * H)
    va_w = jax.random.uniform(kw2, (1, H), jnp.float32, -bound2, bound2)

    lengths = jnp.array([8, 5], jnp.int32)
    mask = (jnp.arange(S)[None, None, :] < lengths[:, None, None]).astype(jnp.int32)

    out = jax.block_until_ready(bahdanau_attention(q, k, v, wa_w, wa_b, va_w, mask))
    ref = bahdanau_attention_ref(q, k, v, wa_w, wa_b, va_w, mask)
    assert out.shape == (B, 1, Dv)
    # bf16 streaming of k/v/qp -> relaxed tolerance vs. the f32 reference.
    assert jnp.allclose(out, ref, atol=2e-2, rtol=2e-2), (
        f"masked: max abs err {jnp.max(jnp.abs(out - ref))}")

    out_u = jax.block_until_ready(bahdanau_attention(q, k, v, wa_w, wa_b, va_w, None))
    ref_u = bahdanau_attention_ref(q, k, v, wa_w, wa_b, va_w, None)
    assert jnp.allclose(out_u, ref_u, atol=2e-2, rtol=2e-2), (
        f"unmasked: max abs err {jnp.max(jnp.abs(out_u - ref_u))}")

    # ---- larger case: B=24, S=16 (multi-block grid with a ragged last block) -
    B2, S2 = 24, 16
    q2 = jax.random.normal(kq2, (B2, H), jnp.float32)
    k2 = jax.random.normal(kk2, (B2, S2, K), jnp.float32)
    v2 = jax.random.normal(kv2, (B2, S2, Dv), jnp.float32)
    lens2 = jax.random.randint(kl2, (B2,), 1, S2 + 1)
    mask2 = (jnp.arange(S2)[None, None, :] < lens2[:, None, None]).astype(jnp.int32)

    out2 = jax.block_until_ready(bahdanau_attention(q2, k2, v2, wa_w, wa_b, va_w, mask2))
    ref2 = bahdanau_attention_ref(q2, k2, v2, wa_w, wa_b, va_w, mask2)
    assert out2.shape == (B2, 1, Dv)
    assert jnp.allclose(out2, ref2, atol=2e-2, rtol=2e-2), (
        f"blocked/ragged: max abs err {jnp.max(jnp.abs(out2 - ref2))}")

    print("KERNEL_OK")
</pallas_src>

<mosaic_0001>
module attributes {stable_mosaic.version = 11 : i64} {
  func.func @_bahdanau_block_kernel(%arg0: i32, %arg1: memref<2x32xbf16, #tpu.memory_space<vmem>>, %arg2: memref<2x8x32xbf16, #tpu.memory_space<vmem>>, %arg3: memref<2x8x32xbf16, #tpu.memory_space<vmem>>, %arg4: memref<2x8xf32, #tpu.memory_space<vmem>>, %arg5: memref<32x32xf32, #tpu.memory_space<vmem>>, %arg6: memref<1x32xf32, #tpu.memory_space<vmem>>, %arg7: memref<2x32xf32, #tpu.memory_space<vmem>>) attributes {dimension_semantics = [#tpu.dimension_semantics<parallel>], iteration_bounds = array<i64: 1>, scalar_prefetch = 0 : i64, scratch_operands = 0 : i64, tpu.core_type = #tpu.core_type<tc>, window_params = [{transform_indices = @transform_0, window_bounds = array<i64: 2, 32>}, {transform_indices = @transform_1, window_bounds = array<i64: 2, 8, 32>}, {transform_indices = @transform_2, window_bounds = array<i64: 2, 8, 32>}, {transform_indices = @transform_3, window_bounds = array<i64: 2, 8>}, {pipeline_mode = #tpu.pipeline_mode<synchronous>, transform_indices = @transform_4, window_bounds = array<i64: 32, 32>}, {pipeline_mode = #tpu.pipeline_mode<synchronous>, transform_indices = @transform_5, window_bounds = array<i64: 1, 32>}, {transform_indices = @transform_6, window_bounds = array<i64: 2, 32>}]} {
    %c0 = arith.constant 0 : index
    %c0_0 = arith.constant 0 : index
    %c0_1 = arith.constant 0 : index
    %0 = vector.load %arg2[%c0, %c0_0, %c0_1] : memref<2x8x32xbf16, #tpu.memory_space<vmem>>, vector<2x8x32xbf16>
    %1 = arith.extf %0 : vector<2x8x32xbf16> to vector<2x8x32xf32>
    %2 = vector.shape_cast %1 : vector<2x8x32xf32> to vector<16x32xf32>
    %c0_2 = arith.constant 0 : index
    %c0_3 = arith.constant 0 : index
    %3 = vector.load %arg5[%c0_2, %c0_3] : memref<32x32xf32, #tpu.memory_space<vmem>>, vector<32x32xf32>
    %cst = arith.constant dense<0.000000e+00> : vector<16x32xf32>
    %4 = tpu.matmul %2, %3, %cst {dimension_numbers = #tpu.dot_dimension_numbers<[1], [0], [0], [1], [0, 0, 1, 1], [], []>} : vector<16x32xf32>, vector<32x32xf32>, vector<16x32xf32> -> vector<16x32xf32>
    %c0_4 = arith.constant 0 : index
    %c0_5 = arith.constant 0 : index
    %5 = vector.load %arg1[%c0_4, %c0_5] : memref<2x32xbf16, #tpu.memory_space<vmem>>, vector<2x32xbf16>
    %6 = arith.extf %5 : vector<2x32xbf16> to vector<2x32xf32>
    %7 = vector.shape_cast %4 : vector<16x32xf32> to vector<2x8x32xf32>
    %8 = vector.shape_cast %6 : vector<2x32xf32> to vector<2x1x32xf32>
    %9 = vector.broadcast %8 : vector<2x1x32xf32> to vector<2x8x32xf32>
    %10 = arith.addf %7, %9 : vector<2x8x32xf32>
    %11 = math.tanh %10 : vector<2x8x32xf32>
    %c0_6 = arith.constant 0 : index
    %c0_7 = arith.constant 0 : index
    %12 = vector.load %arg6[%c0_6, %c0_7] : memref<1x32xf32, #tpu.memory_space<vmem>>, vector<1x32xf32>
    %13 = vector.shape_cast %12 : vector<1x32xf32> to vector<1x1x32xf32>
    %14 = vector.broadcast %13 : vector<1x1x32xf32> to vector<2x8x32xf32>
    %15 = arith.mulf %11, %14 : vector<2x8x32xf32>
    %cst_8 = arith.constant dense<0.000000e+00> : vector<2x8xf32>
    %16 = vector.multi_reduction <add>, %15, %cst_8 [2] : vector<2x8x32xf32> to vector<2x8xf32>
    %c0_9 = arith.constant 0 : index
    %c0_10 = arith.constant 0 : index
    %17 = vector.load %arg4[%c0_9, %c0_10] : memref<2x8xf32, #tpu.memory_space<vmem>>, vector<2x8xf32>
    %cst_11 = arith.constant 0.000000e+00 : f32
    %18 = vector.broadcast %cst_11 : f32 to vector<2x8xf32>
    %19 = arith.cmpf one, %17, %18 : vector<2x8xf32>
    %cst_12 = arith.constant -1.000000e+10 : f32
    %20 = vector.broadcast %cst_12 : f32 to vector<2x8xf32>
    %21 = arith.select %19, %16, %20 : vector<2x8xi1>, vector<2x8xf32>
    %cst_13 = arith.constant dense<0xFF800000> : vector<2xf32>
    %22 = vector.multi_reduction <maximumf>, %21, %cst_13 [1] : vector<2x8xf32> to vector<2xf32>
    %23 = vector.shape_cast %22 : vector<2xf32> to vector<2x1xf32>
    %24 = vector.broadcast %23 : vector<2x1xf32> to vector<2x8xf32>
    %25 = arith.subf %21, %24 : vector<2x8xf32>
    %26 = math.exp %25 : vector<2x8xf32>
    %cst_14 = arith.constant dense<0.000000e+00> : vector<2xf32>
    %27 = vector.multi_reduction <add>, %26, %cst_14 [1] : vector<2x8xf32> to vector<2xf32>
    %28 = vector.shape_cast %27 : vector<2xf32> to vector<2x1xf32>
    %29 = tpu.reciprocal %28 {approx = true} : vector<2x1xf32> -> vector<2x1xf32>
    %30 = vector.broadcast %29 : vector<2x1xf32> to vector<2x8xf32>
    %31 = arith.mulf %26, %30 : vector<2x8xf32>
    %c0_15 = arith.constant 0 : index
    %c0_16 = arith.constant 0 : index
    %c0_17 = arith.constant 0 : index
    %32 = vector.load %arg3[%c0_15, %c0_16, %c0_17] : memref<2x8x32xbf16, #tpu.memory_space<vmem>>, vector<2x8x32xbf16>
    %33 = arith.extf %32 : vector<2x8x32xbf16> to vector<2x8x32xf32>
    %34 = vector.shape_cast %31 : vector<2x8xf32> to vector<2x8x1xf32>
    %35 = vector.broadcast %34 : vector<2x8x1xf32> to vector<2x8x32xf32>
    %36 = arith.mulf %35, %33 : vector<2x8x32xf32>
    %cst_18 = arith.constant dense<0.000000e+00> : vector<2x32xf32>
    %37 = vector.multi_reduction <add>, %36, %cst_18 [1] : vector<2x8x32xf32> to vector<2x32xf32>
    %c0_19 = arith.constant 0 : index
    %c0_20 = arith.constant 0 : index
    %38 = vector.load %arg7[%c0_19, %c0_20] : memref<2x32xf32, #tpu.memory_space<vmem>>, vector<2x32xf32>
    tpu.vector_store %arg7[%c0_19, %c0_20], %37 {strides = array<i32>} : memref<2x32xf32, #tpu.memory_space<vmem>>, vector<2x32xf32>,
    return
  }
  func.func @transform_0(%arg0: i32) -> (i32, i32) {
    %c0_i32 = arith.constant 0 : i32
    %c0_i32_0 = arith.constant 0 : i32
    return %arg0, %c0_i32 : i32, i32
  }
  func.func @transform_1(%arg0: i32) -> (i32, i32, i32) {
    %c0_i32 = arith.constant 0 : i32
    %c0_i32_0 = arith.constant 0 : i32
    %c0_i32_1 = arith.constant 0 : i32
    return %arg0, %c0_i32, %c0_i32_0 : i32, i32, i32
  }
  func.func @transform_2(%arg0: i32) -> (i32, i32, i32) {
    %c0_i32 = arith.constant 0 : i32
    %c0_i32_0 = arith.constant 0 : i32
    %c0_i32_1 = arith.constant 0 : i32
    return %arg0, %c0_i32, %c0_i32_0 : i32, i32, i32
  }
  func.func @transform_3(%arg0: i32) -> (i32, i32) {
    %c0_i32 = arith.constant 0 : i32
    %c0_i32_0 = arith.constant 0 : i32
    return %arg0, %c0_i32 : i32, i32
  }
  func.func @transform_4(%arg0: i32) -> (i32, i32) {
    %c0_i32 = arith.constant 0 : i32
    %c0_i32_0 = arith.constant 0 : i32
    %c0_i32_1 = arith.constant 0 : i32
    return %c0_i32, %c0_i32_0 : i32, i32
  }
  func.func @transform_5(%arg0: i32) -> (i32, i32) {
    %c0_i32 = arith.constant 0 : i32
    %c0_i32_0 = arith.constant 0 : i32
    %c0_i32_1 = arith.constant 0 : i32
    return %c0_i32, %c0_i32_0 : i32, i32
  }
  func.func @transform_6(%arg0: i32) -> (i32, i32) {
    %c0_i32 = arith.constant 0 : i32
    %c0_i32_0 = arith.constant 0 : i32
    return %arg0, %c0_i32 : i32, i32
  }
}

</mosaic_0001>

<bundles_post_ra>
// kernel: tpu_custom_call.1
= control target key start
LH: loop header
LB: loop body
LE: loop exit
PB: predicated region body
PF: predicated region fallthrough
CT: control target
= control target key end

     0   :  { %11 = vsyncpa [#allocation3], 0  ;;  %s591_s0 = inlined_call_operand.hbm [shape: bf16[2,32], index: 0, kind: input, shape index: {}]   ;;  %s592_s1 = inlined_call_operand.hbm [shape: bf16[2,8,32], index: 1, kind: input, shape index: {}]   ;;  %s593_s2 = inlined_call_operand.hbm [shape: bf16[2,8,32], index: 2, kind: input, shape index: {}]   ;;  %s594_s3 = inlined_call_operand.vmem [shape: f32[2,8], index: 3, kind: input, shape index: {}]   ;;  %s595_s4 = inlined_call_operand.hbm [shape: f32[32,32], index: 4, kind: input, shape index: {}]   ;;  %s596_s5 = inlined_call_operand.vmem [shape: f32[1,32], index: 5, kind: input, shape index: {}]   ;;  %s597_s6 = inlined_call_operand.hbm [shape: f32[2,32], index: 6, kind: output, shape index: {}]  }
   0x1   :  { %12 = vsyncpa [#allocation6], 0 }
   0x2   :  { %13 = vsyncpa [#allocation9], 0 }
   0x3   :  { %14 = vsyncpa [#allocation4], 0  ;;  %s466_s21 = smov [#allocation5]   ;;  %s348_s25 = scalar_lea.hbm %s592_s1, 128 }
   0x4   :  { %s30_s22 = sshll.u32 %s466_s21, 4  ;;  %p349_p0 = scmp.ne.s32.totalorder %s592_s1, %s348_s25  ;;  %s31_s22 = int_to_ptr.vmem [resolvable:$true] %s30_s22 }
   0x5   :  { %p352_p1 = scmp.lt.u32.totalorder %s348_s25, %s592_s1 }
   0x7   :  { %p354_p2 = pnand %p352_p1, %p349_p0 }
   0x9   :  { %357 = shalt.err (!%p354_p2)
}
   0xa   :  { %s358_s30 = scalar_lea.vmem %s31_s22, 128  ;;  %p363_p4 = scmp.lt.s32.totalorder %s31_s22, %s31_s22 }
   0xb   :  { %p359_p3 = scmp.ne.s32.totalorder %s31_s22, %s358_s30  ;;  %p364_p5 = scmp.lt.s32.totalorder %s358_s30, %s358_s30 }
   0xd   :  { %p365_p6 = por %p364_p5, %p363_p4 }
   0xf   :  { %p366_p7 = pnand %p365_p6, %p359_p3 }
  0x11   :  { %369 = shalt.err (!%p366_p7)
}
  0x12   :  { %s467_s7 = smov 64   ;;  %s468_s8 = smov 4  }
  0x13   :  { %36 = dma.hbm_to_vmem [thread:$0]  %s592_s1, 128, %s31_s22, [#allocation6], %s467_s7, %s467_s7, %s468_s8  }
  0x14   :  { %s469_s11 = smov [#allocation2]   ;;  %s470_s13 = smov [#allocation7]  }
  0x15   :  { %s21_s12 = sshll.u32 %s469_s11, 4  ;;  %s42_s14 = sshll.u32 %s470_s13, 4  ;;  %s22_s12 = int_to_ptr.vmem [resolvable:$true] %s21_s12  ;;  %s43_s14 = int_to_ptr.vmem [resolvable:$true] %s42_s14 }
  0x16   :  { %s370_s17 = scalar_lea.hbm %s591_s0, 16 }
  0x17   :  { %p371_p8 = scmp.ne.s32.totalorder %s591_s0, %s370_s17  ;;  %p374_p9 = scmp.lt.u32.totalorder %s370_s17, %s591_s0 }
  0x19   :  { %p376_p10 = pnand %p374_p9, %p371_p8 }
  0x1b   :  { %379 = shalt.err (!%p376_p10)
}
  0x1c   :  { %s380_s1 = scalar_lea.vmem %s22_s12, 16  ;;  %s384_s22 = scalar_lea.vmem %s22_s12, 32 }
  0x1d   :  { %p381_p11 = scmp.ne.s32.totalorder %s22_s12, %s380_s1  ;;  %p385_p12 = scmp.lt.s32.totalorder %s22_s12, %s22_s12 }
  0x1e   :  { %p386_p13 = scmp.lt.s32.totalorder %s384_s22, %s380_s1 }
  0x20   :  { %p387_p0 = por %p386_p13, %p385_p12 }
  0x22   :  { %p388_p1 = pnand %p387_p0, %p381_p11 }
  0x24   :  { %391 = shalt.err (!%p388_p1)
}
  0x25   :  { %24 = dma.hbm_to_vmem [thread:$0]  %s591_s0, 16, %s22_s12, [#allocation3]  }
  0x26   :  { %s392_s27 = scalar_lea.hbm %s593_s2, 128 }
  0x27   :  { %p393_p2 = scmp.ne.s32.totalorder %s593_s2, %s392_s27  ;;  %p396_p3 = scmp.lt.u32.totalorder %s392_s27, %s593_s2 }
  0x29   :  { %p398_p4 = pnand %p396_p3, %p393_p2 }
  0x2b   :  { %401 = shalt.err (!%p398_p4)
}
  0x2c   :  { %s402_s10 = scalar_lea.vmem %s43_s14, 128  ;;  %p407_p6 = scmp.lt.s32.totalorder %s43_s14, %s43_s14 }
  0x2d   :  { %p403_p5 = scmp.ne.s32.totalorder %s43_s14, %s402_s10  ;;  %p408_p7 = scmp.lt.s32.totalorder %s402_s10, %s402_s10 }
  0x2f   :  { %p409_p8 = por %p408_p7, %p407_p6 }
  0x31   :  { %p410_p9 = pnand %p409_p8, %p403_p5 }
  0x33   :  { %413 = shalt.err (!%p410_p9)
}
  0x34   :  { %48 = dma.hbm_to_vmem [thread:$0]  %s593_s2, 128, %s43_s14, [#allocation6], %s467_s7, %s467_s7, %s468_s8  }
  0x35   :  { %s471_s12 = smov [#allocation8]   ;;  %s414_s17 = scalar_lea.hbm %s595_s4, 512 }
  0x36   :  { %s56_s13 = sshll.u32 %s471_s12, 4  ;;  %p415_p10 = scmp.ne.s32.totalorder %s595_s4, %s414_s17  ;;  %s57_s13 = int_to_ptr.vmem [resolvable:$true] %s56_s13 }
  0x37   :  { %p418_p11 = scmp.lt.u32.totalorder %s414_s17, %s595_s4 }
  0x39   :  { %p420_p12 = pnand %p418_p11, %p415_p10 }
  0x3b   :  { %423 = shalt.err (!%p420_p12)
}
  0x3c   :  { %s424_s1 = scalar_lea.vmem %s57_s13, 512  ;;  %p429_p0 = scmp.lt.s32.totalorder %s57_s13, %s57_s13 }
  0x3d   :  { %p425_p13 = scmp.ne.s32.totalorder %s57_s13, %s424_s1  ;;  %p430_p1 = scmp.lt.s32.totalorder %s424_s1, %s424_s1 }
  0x3f   :  { %p431_p2 = por %p430_p1, %p429_p0 }
  0x41   :  { %p432_p3 = pnand %p431_p2, %p425_p13 }
  0x43   :  { %435 = shalt.err (!%p432_p3)
}
  0x44   :  { %s472_s2 = smov 128   ;;  %s473_s7 = smov 8  }
  0x45   :  { %62 = dma.hbm_to_vmem [thread:$0]  %s595_s4, 512, %s57_s13, [#allocation9], %s472_s2, %s472_s2, %s473_s7  }
  0x46   :  { %458 = dma.done.wait [#allocation3], 16  }
  0x47   :  { %459 = vsyncadd [#allocation3], 4294967280 }
  0x48   :  { %460 = dma.done.wait [#allocation6], 256  }
  0x49   :  { %461 = vsyncadd [#allocation6], 4294967040 }
  0x4a   :  { %462 = dma.done.wait [#allocation9], 512  }
  0x4b   :  { %463 = vsyncadd [#allocation9], 4294966784  ;;  %v81_v0 = vld [vmem:[#allocation8] sm:$0xff]  ;;  %v82_v1 = vld [vmem:[#allocation8 + $0x8] sm:$0xff]  ;;  %vm85_vm0 = vcmask 261120   ;;  %v173_v11 = vlaneseq  ;;  %vm221_vm1 = vcmask 1041409  }
  0x4c   :  { %v83_v2 = vld [vmem:[#allocation8 + $0x10] sm:$0xff]  ;;  %v322_v3 = vpack.c.bf16 %v82_v1, %v81_v0  ;;  %v84_v4 = vld [vmem:[#allocation8 + $0x18] sm:$0xff]  ;;  %v474_v9 = vmov 1966171168   ;;  %v167_v14 = vld [vmem:[#allocation2] sm:$0x1] }
  0x4d   :  { %v298_v5 = vld [vmem:[#allocation5] sm:$0xff]   ;;  %v326_v6 = vpack.c.bf16 %v84_v4, %v83_v2  ;;  %v171_v10 = vunpack.c.l.s4 %v474_v9  ;;  %v174_v13 = vshrl.u32 %v173_v11, 7  ;;  %v168_v15 = vunpack.c.l.bf16 %v167_v14  ;;  %v296_v26 = vld [vmem:[%s596_s5] ss:$0 sm:$0xff]  ;;  %v302_v54 = vld [vmem:[#allocation7] sm:$0xff]  }
  0x4e   :  { %v299_v7 = vunpack.c.l.bf16 %v298_v5  ;;  %323 = vmatprep.subr.bf16.mxu0 %v322_v3  ;;  %v300_v8 = vunpack.c.h.bf16 %v298_v5  ;;  %v212_v33 = vand.u32 127, %v173_v11  ;;  %v207_v36 = vld [vmem:[%s594_s3] sm:$0x3]  ;;  %vm225_vm3 = vcmask 58368   ;;  %s475_s3 = smov [#allocation10]  }
  0x4f   :  { %325 = vmatpush3.bf16.msra.mxu0 %v322_v3  ;;  %v172_v12 = vunpack.c.0.s8 %v171_v10  ;;  %v180_v19 = vsub.s32 0, %v174_v13  ;;  %vm208_vm2 = vcmp.ne.f32.partialorder %v207_v36, 0.0  ;;  %v250_v49 = vsub.s32 1, %v174_v13  ;;  %s283_s5 = sshll.u32 %s475_s3, 4  ;;  %s284_s5 = int_to_ptr.vmem [resolvable:$true] %s283_s5 }
  0x50   :  { %319 = vmatprep.mubr.msk.f32.mxu0 %vm85_vm0, %v299_v7  ;;  %327 = vmatprep.subr.bf16.mxu0 %v326_v6  ;;  %v215_v35 = vsub.s32 %v212_v33, %v174_v13  ;;  %v304_v55 = vunpack.c.h.bf16 %v302_v54  ;;  %v303_v56 = vunpack.c.l.bf16 %v302_v54  ;;  %vm275_vm4 = vcmask 254976   ;;  %s436_s25 = scalar_lea.vmem %s284_s5, 32  ;;  %p441_p5 = scmp.lt.s32.totalorder %s284_s5, %s284_s5 }
  0x51   :  { %v175_v16 = vsub.s32 %v172_v12, %v174_v13  ;;  %p437_p4 = scmp.ne.s32.totalorder %s284_s5, %s436_s25  ;;  %p442_p6 = scmp.lt.s32.totalorder %s436_s25, %s436_s25 }
  0x53   :  { %329 = vmatpush3.bf16.msra.mxu0 %v326_v6  ;;  %v176_v17 = vrot.slane %v168_v15, %v175_v16  ;;  %p443_p7 = por %p442_p6, %p441_p5 }
  0x55   :  { %v177_v18 = vcombine.high %v176_v17, %v176_v17  ;;  %v181_v21 = vrot.slane %v176_v17, %v180_v19  ;;  %p444_p8 = pnand %p443_p7, %p437_p4 }
  0x56   :  { %320 = vmatmul.mubr.msk.f32.vlgmr.msra.gmra.mrb[0].mxu0 %vm85_vm0, %v300_v8 }
  0x57   :  { %v185_v20 = vrot.slane %v177_v18, %v180_v19 }
 0x129   :  { %v321_v22 = vpop.f32.mrb[0].mxu0 }
 0x12a   :  { %v189_v23 = vadd.f32 %v321_v22, %v185_v20  ;;  %v158_v24 = vpop.f32.mrb[1].mxu0 }
 0x12b   :  { %v188_v25 = vadd.f32 %v181_v21, %v158_v24 }
 0x12c   :  { %340 = vtanh.f32 %v189_v23 }
 0x12d   :  { %342 = vtanh.f32 %v188_v25 }
 0x136   :  { %v341_v27 = vpop.eup %340 }
 0x137   :  { %v343_v28 = vpop.eup %342  ;;  %v200_v31 = vmul.f32 %v341_v27, %v296_v26 }
 0x138   :  { %v199_v29 = vmul.f32 %v343_v28, %v296_v26 }
 0x139   :  { %v204_v32 = vsel %vm85_vm0, %v200_v31, 0.0 }
 0x13a   :  { %v201_v30 = vsel %vm85_vm0, %v199_v29, 0.0 }
 0x13b   :  { %202 = vadd.xlane.f32.xlu0 %v201_v30 }
 0x13f   :  { %205 = vadd.xlane.f32.xlu0 %v204_v32 }
 0x1c8   :  { %v203_v34 = vpop.xlane.xlu0 %202 }
 0x1c9   :  { %v216_v38 = vrot.slane %v203_v34, %v215_v35 }
 0x1cc   :  { %v206_v37 = vpop.xlane.xlu0 %205 }
 0x1cd   :  { %v220_v39 = vrot.slane %v206_v37, %v215_v35 }
 0x1cf   :  { %v222_v40 = vsel %vm221_vm1, %v220_v39, %v216_v38 }
 0x1d0   :  { %v224_v41 = vsel %vm208_vm2, %v222_v40, -1e+10 }
 0x1d1   :  { %v226_v42 = vsel %vm225_vm3, %v224_v41, -inf }
 0x1d2   :  { %227 = vmax.xlane.f32.xlu1 %v226_v42 }
 0x25f   :  { %v228_v43 = vpop.xlane.xlu1 %227 }
 0x260   :  { %v229_v44 = vsub.f32 %v224_v41, %v228_v43 }
 0x262   :  { %v230_v45 = vmul.f32 1.442695, %v229_v44 }
 0x264   :  { %344 = vpow2.f32 %v230_v45 }
 0x26e   :  { %v345_v46 = vpop.eup %344 }
 0x26f   :  { %v232_v47 = vsel %vm225_vm3, %v345_v46, 0.0 }
 0x270   :  { %233 = vadd.xlane.f32.xlu1 %v232_v47 }
 0x2fd   :  { %v234_v48 = vpop.xlane.xlu1 %233 }
 0x2fe   :  { %346 = vrcp.f32 %v234_v48 }
 0x308   :  { %v347_v50 = vpop.eup %346 }
 0x309   :  { %v236_v51 = vmul.f32 %v347_v50, %v345_v46 }
 0x30b   :  { %v251_v52 = vrot.slane %v236_v51, %v250_v49  ;;  %v244_v53 = vrot.slane %v236_v51, %v180_v19 }
 0x30d   :  { %253 = vbcast.lane.b32.xlu1 %v251_v52, 256  ;;  %246 = vbcast.lane.b32.xlu0 %v244_v53, 256 }
 0x37f   :  { %v254_v57 = vpop.permute.xlu1 %253  ;;  %v247_v58 = vpop.permute.xlu0 %246 }
 0x380   :  { %v256_v59 = vmul.f32 %v304_v55, %v254_v57  ;;  %v255_v60 = vmul.f32 %v303_v56, %v247_v58 }
 0x382   :  { %v264_v61 = vsel %vm85_vm0, %v256_v59, 0.0  ;;  %v257_v62 = vsel %vm85_vm0, %v255_v60, 0.0 }
 0x383   :  { %v265_v63 = vrot.slane %v264_v61, 4  ;;  %v258_v0 = vrot.slane %v257_v62, 4 }
 0x385   :  { %v266_v1 = vadd.f32 %v265_v63, %v264_v61  ;;  %v259_v2 = vadd.f32 %v258_v0, %v257_v62 }
 0x387   :  { %v267_v3 = vrot.slane %v266_v1, 2  ;;  %v260_v4 = vrot.slane %v259_v2, 2 }
 0x389   :  { %v268_v5 = vadd.f32 %v267_v3, %v266_v1  ;;  %v261_v6 = vadd.f32 %v260_v4, %v259_v2 }
 0x38b   :  { %v269_v7 = vrot.slane %v268_v5, 1  ;;  %v262_v8 = vrot.slane %v261_v6, 1 }
 0x38d   :  { %v270_v9 = vadd.f32 %v269_v7, %v268_v5  ;;  %v263_v10 = vadd.f32 %v262_v8, %v261_v6 }
 0x38f   :  { %v273_v11 = vsel %vm221_vm1, %v270_v9, %v263_v10 }
 0x390   :  { %276 = vst.msk [vmem:[#allocation10] sm:$0x3] %vm275_vm4, %v273_v11 }
 0x391   :  { %447 = shalt.err (!%p444_p8)
}
 0x392   :  { %s448_s28 = scalar_lea.hbm %s597_s6, 32 }
 0x393   :  { %p449_p9 = scmp.ne.s32.totalorder %s597_s6, %s448_s28  ;;  %p452_p10 = scmp.lt.u32.totalorder %s448_s28, %s597_s6 }
 0x395   :  { %p454_p11 = pnand %p452_p10, %p449_p9 }
 0x397   :  { %457 = shalt.err (!%p454_p11)
}
 0x398   :  { %286 = dma.vmem_to_hbm [thread:$0]  %s284_s5, 32, %s597_s6, [#allocation4]  }
 0x399   :  { %464 = dma.done.wait [#allocation4], 32  }
 0x39a   :  { %465 = vsyncadd [#allocation4], 4294967264 }
 0x39b   :  { %290 = vsyncpa [#allocation3], 1 }
 0x39c   :  { %291 = vsyncpa [#allocation6], 1 }
 0x39d   :  { %292 = vsyncpa [#allocation9], 1 }
 0x39e   :  { %293 = vsyncpa [#allocation4], 1 }

</bundles_post_ra>
